<compile_context>
chip_gen: v6e
topology: v6e:2x2x1
jax: 0.10.0
libtpu: 0.0.40
codegen_flags: <defaults>
</compile_context>

<pallas_src>
import jax
import jax.numpy as jnp
from jax.experimental import pallas as pl
from jax.experimental.pallas import tpu as pltpu


_PREF_TM = 1024   # preferred M tile (multiple of 256 -> MXU-native on v6e/v7x)
_PREF_TN = 1024   # preferred N (vocab) tile


# ----------------------------- kernels -------------------------------------


def _lmhead_kernel_single(x_ref, w_ref, b_ref, o_ref):
    # Whole-K fast path: one MXU pass per output tile, no accumulator scratch.
    acc = jnp.dot(x_ref[...], w_ref[...], preferred_element_type=jnp.float32)
    o_ref[...] = (acc + b_ref[...]).astype(o_ref.dtype)


def _lmhead_kernel_multi(x_ref, w_ref, b_ref, o_ref, acc_ref):
    # K-split fallback for very large d_model (reduction axis last in the grid).
    k = pl.program_id(2)

    @pl.when(k == 0)
    def _():
        acc_ref[...] = jnp.zeros_like(acc_ref)

    acc_ref[...] += jnp.dot(x_ref[...], w_ref[...],
                            preferred_element_type=jnp.float32)

    @pl.when(k == pl.num_programs(2) - 1)
    def _():
        o_ref[...] = (acc_ref[...] + b_ref[...]).astype(o_ref.dtype)


# ----------------------------- helpers --------------------------------------


def _round_up(x, m):
    return ((x + m - 1) // m) * m


def _vmem_capacity_bytes():
    try:
        info = pltpu.get_tpu_info()
        cap = int(getattr(info, "vmem_capacity_bytes", 0) or 0)
        if cap > 0:
            return cap
    except Exception:
        pass
    return 64 * 1024 * 1024  # conservative fallback (v7x per-TensorCore VMEM)


# ----------------------------- one-time parameter prep ----------------------


def prepare_lm_head_params(weight, bias, *, weight_dtype=None, tn=None):
    """One-time prep (do this at parameter-load time, NOT per forward call).

    weight: [vocab, d_model]  (native PyTorch nn.Linear layout)
    bias:   [vocab]

    Transposes the weight once to [d_model, vocab] (canonical MXU RHS), zero-pads
    K to a 128 multiple and N to the chosen tn tile, and casts to `weight_dtype`
    (e.g. jnp.bfloat16 to halve HBM traffic).  Bias is stored padded in f32.
    """
    vocab, d_model = weight.shape
    if weight_dtype is not None:
        weight = weight.astype(weight_dtype)

    if tn is None:
        tn = min(_PREF_TN, _round_up(vocab, 128))
        if tn >= 256:
            tn = (tn // 256) * 256  # MXU-native multiple (256^2 v6e/v7x, 128^2 v5e)
    k_pad = _round_up(d_model, 128)
    n_pad = _round_up(vocab, tn)

    w_kn = jnp.pad(jnp.transpose(weight),
                   ((0, k_pad - d_model), (0, n_pad - vocab)))          # [K, N]
    b2 = jnp.pad(bias.astype(jnp.float32).reshape(1, vocab),
                 ((0, 0), (0, n_pad - vocab)))                           # [1, N]

    return {"w_kn": w_kn, "bias": b2, "d_model": d_model, "vocab": vocab, "tn": tn}


# ----------------------------- forward ---------------------------------------


def lm_head_apply(x, params, *, tm=None, tk=None, compute_dtype=None,
                  out_dtype=None, vmem_budget_bytes=None):
    """LMHead forward: x @ weight.T + bias, using prepared params.

    x: [B, S, d_model]
    """
    w_kn, b2 = params["w_kn"], params["bias"]
    d_model, vocab, tn = params["d_model"], params["vocab"], params["tn"]

    B, S, k_in = x.shape
    assert k_in == d_model, "x last dim must equal d_model"

    out_dtype = x.dtype if out_dtype is None else out_dtype
    if compute_dtype is not None:
        x = x.astype(compute_dtype)

    M = B * S
    k_pad, n_pad = w_kn.shape
    x2 = x.reshape(M, d_model)

    xb = x2.dtype.itemsize
    wb = w_kn.dtype.itemsize
    ob = jnp.dtype(out_dtype).itemsize
    sub = 8 if xb >= 4 else (16 if xb == 2 else 32)    # sublane multiple

    cap = _vmem_capacity_bytes()
    budget = int(0.70 * cap) if vmem_budget_bytes is None else int(vmem_budget_bytes)

    # --- tm: fixed preferred MXU-native tile, padded up; small-M (decode) shapes
    # just take the rounded-up extent (weight-stream bound regardless of tiles).
    m_ru = _round_up(M, sub)
    if tm is None:
        if m_ru >= _PREF_TM:
            tm = _PREF_TM
        elif m_ru >= 256:
            tm = _round_up(m_ru, 256)
        else:
            tm = m_ru
    else:
        tm = max(_round_up(tm, sub), sub)
    m_pad = _round_up(M, tm)

    # --- tk: whole (padded) K when the double-buffered working set fits the
    # budget; otherwise the largest 128-multiple divisor of k_pad that fits.
    per_k = 2 * (tm * xb + tn * wb)                 # double-buffered x/w tiles
    fixed = 2 * (tm * tn * ob) + 2 * (8 * tn * 4)   # out tile + bias tile
    if tk is None:
        if fixed + k_pad * per_k <= budget:
            tk = k_pad
        else:
            cap_k = max((budget - fixed - tm * tn * 4) // per_k, 128)
            cap_k = max((cap_k // 128) * 128, 128)
            nk128 = k_pad // 128
            d = 1
            for cand in range(min(cap_k // 128, nk128), 0, -1):
                if nk128 % cand == 0:
                    d = cand
                    break
            tk = 128 * d
    else:
        # snap explicit tk to a 128-multiple divisor of the prepared k_pad
        tk = max((min(tk, k_pad) // 128) * 128, 128)
        nk128 = k_pad // 128
        while nk128 % (tk // 128) != 0:
            tk -= 128
    n_k = k_pad // tk

    if m_pad != M or k_pad != d_model:
        x2 = jnp.pad(x2, ((0, m_pad - M), (0, k_pad - d_model)))

    n_i, n_j = m_pad // tm, n_pad // tn

    # Honest streaming cost estimate (weight re-read per M-tile, x re-read per
    # N-tile in the K-split order) so XLA schedules HBM-heavy neighbors around us.
    x_bytes = m_pad * k_pad * xb * (1 if n_k == 1 else n_j)
    w_bytes = k_pad * n_pad * wb * n_i
    cost = pl.CostEstimate(
        flops=2 * m_pad * n_pad * k_pad,
        transcendentals=0,
        bytes_accessed=x_bytes + w_bytes + n_pad * 4 * n_i + m_pad * n_pad * ob,
    )

    # Working set (double-buffering counted exactly once) with ~1.25x headroom,
    # capped below physical VMEM so Mosaic keeps room for internal scratch.
    acc_bytes = tm * tn * 4 if n_k > 1 else 0
    est = 2 * (tm * tk * xb + tk * tn * wb + tm * tn * ob + 8 * tn * 4) + acc_bytes
    vmem_limit = int(min(max(int(1.25 * est), 32 * 1024 * 1024, est + (4 << 20)),
                         int(0.9 * cap)))

    if n_k == 1:
        out = pl.pallas_call(
            _lmhead_kernel_single,
            out_shape=jax.ShapeDtypeStruct((m_pad, n_pad), out_dtype),
            grid_spec=pltpu.PrefetchScalarGridSpec(
                num_scalar_prefetch=0,
                grid=(n_i, n_j),
                in_specs=[
                    pl.BlockSpec((tm, tk), lambda i, j: (i, 0)),   # x [M, K]
                    pl.BlockSpec((tk, tn), lambda i, j: (0, j)),   # W [K, N] (pre-transposed)
                    pl.BlockSpec((1, tn), lambda i, j: (0, j)),    # bias [1, N]
                ],
                out_specs=pl.BlockSpec((tm, tn), lambda i, j: (i, j)),
            ),
            compiler_params=pltpu.CompilerParams(
                dimension_semantics=("parallel", "parallel"),
                vmem_limit_bytes=vmem_limit,
            ),
            cost_estimate=cost,
        )(x2, w_kn, b2)
    else:
        out = pl.pallas_call(
            _lmhead_kernel_multi,
            out_shape=jax.ShapeDtypeStruct((m_pad, n_pad), out_dtype),
            grid_spec=pltpu.PrefetchScalarGridSpec(
                num_scalar_prefetch=0,
                grid=(n_i, n_j, n_k),
                in_specs=[
                    pl.BlockSpec((tm, tk), lambda i, j, k: (i, k)),
                    pl.BlockSpec((tk, tn), lambda i, j, k: (k, j)),
                    pl.BlockSpec((1, tn), lambda i, j, k: (0, j)),
                ],
                out_specs=pl.BlockSpec((tm, tn), lambda i, j, k: (i, j)),
                scratch_shapes=[pltpu.VMEM((tm, tn), jnp.float32)],
            ),
            compiler_params=pltpu.CompilerParams(
                dimension_semantics=("parallel", "parallel", "arbitrary"),
                vmem_limit_bytes=vmem_limit,
            ),
            cost_estimate=cost,
        )(x2, w_kn, b2)

    return out[:M, :vocab].reshape(B, S, vocab)


def lm_head(x, weight, bias, *, tm=None, tn=None, tk=None, compute_dtype=None,
            out_dtype=None, vmem_budget_bytes=None):
    """Convenience wrapper.  NOTE: in production call prepare_lm_head_params ONCE
    at parameter-load time and reuse `params` across forwards (the weight
    transpose/pad/cast then amortizes to zero); this wrapper re-prepares per call.
    """
    params = prepare_lm_head_params(weight, bias, weight_dtype=compute_dtype, tn=tn)
    return lm_head_apply(x, params, tm=tm, tk=tk, compute_dtype=compute_dtype,
                         out_dtype=out_dtype, vmem_budget_bytes=vmem_budget_bytes)


# ----------------------------- test ------------------------------------------


if __name__ == "__main__":
    # config: d_model=128, vocab_size=256 ; input: batch=2, seq=8
    batch, seq, d_model, vocab_size = 2, 8, 128, 256

    key = jax.random.PRNGKey(0)
    kx, kw, kb = jax.random.split(key, 3)

    x = jax.random.normal(kx, (batch, seq, d_model), dtype=jnp.float32)
    bound = 1.0 / (d_model ** 0.5)   # mimics nn.Linear uniform init bound
    weight = jax.random.uniform(
        kw, (vocab_size, d_model), minval=-bound, maxval=bound, dtype=jnp.float32)
    bias = jax.random.uniform(
        kb, (vocab_size,), minval=-bound, maxval=bound, dtype=jnp.float32)

    # One-time parameter prep, then the kernel (whole-K single-pass path here).
    params = prepare_lm_head_params(weight, bias)
    out = jax.block_until_ready(lm_head_apply(x, params))

    ref = x @ weight.T + bias
    assert out.shape == (batch, seq, vocab_size)
    assert jnp.allclose(out, ref, atol=1e-5, rtol=1e-5)

    # Also exercise the K-split accumulator fallback path.
    d2, v2 = 256, 384
    bound2 = 1.0 / (d2 ** 0.5)
    x_b = jax.random.normal(kx, (batch, seq, d2), dtype=jnp.float32)
    w_b = jax.random.uniform(kw, (v2, d2), minval=-bound2, maxval=bound2,
                             dtype=jnp.float32)
    b_b = jax.random.uniform(kb, (v2,), minval=-bound2, maxval=bound2,
                             dtype=jnp.float32)
    out_b = jax.block_until_ready(lm_head(x_b, w_b, b_b, tk=128))
    ref_b = x_b @ w_b.T + b_b
    assert jnp.allclose(out_b, ref_b, atol=1e-5, rtol=1e-5)

    print("KERNEL_OK")
</pallas_src>

<mosaic_0001>
module attributes {stable_mosaic.version = 11 : i64} {
  func.func @_lmhead_kernel_single(%arg0: i32, %arg1: i32, %arg2: memref<16x128xf32, #tpu.memory_space<vmem>>, %arg3: memref<128x256xf32, #tpu.memory_space<vmem>>, %arg4: memref<1x256xf32, #tpu.memory_space<vmem>>, %arg5: memref<16x256xf32, #tpu.memory_space<vmem>>) attributes {dimension_semantics = [#tpu.dimension_semantics<parallel>, #tpu.dimension_semantics<parallel>], iteration_bounds = array<i64: 1, 1>, scalar_prefetch = 0 : i64, scratch_operands = 0 : i64, tpu.core_type = #tpu.core_type<tc>, window_params = [{transform_indices = @transform_0, window_bounds = array<i64: 16, 128>}, {transform_indices = @transform_1, window_bounds = array<i64: 128, 256>}, {transform_indices = @transform_2, window_bounds = array<i64: 1, 256>}, {transform_indices = @transform_3, window_bounds = array<i64: 16, 256>}]} {
    %c0 = arith.constant 0 : index
    %c0_0 = arith.constant 0 : index
    %0 = vector.load %arg2[%c0, %c0_0] : memref<16x128xf32, #tpu.memory_space<vmem>>, vector<16x128xf32>
    %c0_1 = arith.constant 0 : index
    %c0_2 = arith.constant 0 : index
    %1 = vector.load %arg3[%c0_1, %c0_2] : memref<128x256xf32, #tpu.memory_space<vmem>>, vector<128x256xf32>
    %cst = arith.constant dense<0.000000e+00> : vector<16x256xf32>
    %2 = tpu.matmul %0, %1, %cst {dimension_numbers = #tpu.dot_dimension_numbers<[1], [0], [0], [1], [0, 0, 1, 1], [], []>} : vector<16x128xf32>, vector<128x256xf32>, vector<16x256xf32> -> vector<16x256xf32>
    %c0_3 = arith.constant 0 : index
    %c0_4 = arith.constant 0 : index
    %3 = vector.load %arg4[%c0_3, %c0_4] : memref<1x256xf32, #tpu.memory_space<vmem>>, vector<1x256xf32>
    %4 = vector.broadcast %3 : vector<1x256xf32> to vector<16x256xf32>
    %5 = arith.addf %2, %4 : vector<16x256xf32>
    %c0_5 = arith.constant 0 : index
    %c0_6 = arith.constant 0 : index
    %6 = vector.load %arg5[%c0_5, %c0_6] : memref<16x256xf32, #tpu.memory_space<vmem>>, vector<16x256xf32>
    tpu.vector_store %arg5[%c0_5, %c0_6], %5 {strides = array<i32>} : memref<16x256xf32, #tpu.memory_space<vmem>>, vector<16x256xf32>,
    return
  }
  func.func @transform_0(%arg0: i32, %arg1: i32) -> (i32, i32) {
    %c0_i32 = arith.constant 0 : i32
    %c0_i32_0 = arith.constant 0 : i32
    return %arg0, %c0_i32 : i32, i32
  }
  func.func @transform_1(%arg0: i32, %arg1: i32) -> (i32, i32) {
    %c0_i32 = arith.constant 0 : i32
    %c0_i32_0 = arith.constant 0 : i32
    return %c0_i32, %arg1 : i32, i32
  }
  func.func @transform_2(%arg0: i32, %arg1: i32) -> (i32, i32) {
    %c0_i32 = arith.constant 0 : i32
    %c0_i32_0 = arith.constant 0 : i32
    return %c0_i32, %arg1 : i32, i32
  }
  func.func @transform_3(%arg0: i32, %arg1: i32) -> (i32, i32) {
    %c0_i32 = arith.constant 0 : i32
    return %arg0, %arg1 : i32, i32
  }
}

</mosaic_0001>

<bundles_post_ra>
// kernel: tpu_custom_call.1
= control target key start
LH: loop header
LB: loop body
LE: loop exit
PB: predicated region body
PF: predicated region fallthrough
CT: control target
= control target key end

     0   :  { %8 = vsyncpa [#allocation3], 0  ;;  %s340_s0 = inlined_call_operand.hbm [shape: f32[16,128], index: 0, kind: input, shape index: {}]   ;;  %s341_s1 = inlined_call_operand.hbm [shape: f32[128,256], index: 1, kind: input, shape index: {}]   ;;  %s342_s2 = inlined_call_operand.vmem [shape: f32[1,256], index: 2, kind: input, shape index: {}]   ;;  %s343_s3 = inlined_call_operand.hbm [shape: f32[16,256], index: 3, kind: output, shape index: {}]  }
   0x1   :  { %9 = vsyncpa [#allocation6], 0 }
   0x2   :  { %10 = vsyncpa [#allocation4], 0  ;;  %s294_s12 = smov [#allocation2]  }
   0x3   :  { %s16_s13 = sshll.u32 %s294_s12, 4  ;;  %s17_s13 = int_to_ptr.vmem [resolvable:$true] %s16_s13 }
   0x4   :  { %s236_s14 = scalar_lea.vmem %s17_s13, 256  ;;  %p241_p1 = scmp.lt.s32.totalorder %s17_s13, %s17_s13 }
   0x5   :  { %p237_p0 = scmp.ne.s32.totalorder %s17_s13, %s236_s14  ;;  %p242_p2 = scmp.lt.s32.totalorder %s236_s14, %s236_s14 }
   0x7   :  { %p243_p3 = por %p242_p2, %p241_p1 }
   0x9   :  { %p244_p4 = pnand %p243_p3, %p237_p0 }
   0xb   :  { %247 = shalt.err (!%p244_p4)
}
   0xc   :  { %s295_s15 = smov 128   ;;  %s296_s16 = smov 8  }
   0xd   :  { %22 = dma.hbm_to_vmem [thread:$0]  %s340_s0, 256, %s17_s13, [#allocation3], %s295_s15, %s295_s15, %s296_s16  }
   0xe   :  { %s297_s19 = smov [#allocation5]  }
   0xf   :  { %s28_s20 = sshll.u32 %s297_s19, 4  ;;  %s29_s20 = int_to_ptr.vmem [resolvable:$true] %s28_s20 }
  0x10   :  { %s256_s21 = scalar_lea.vmem %s29_s20, 4096  ;;  %p261_p6 = scmp.lt.s32.totalorder %s29_s20, %s29_s20 }
  0x11   :  { %p257_p5 = scmp.ne.s32.totalorder %s29_s20, %s256_s21  ;;  %p262_p7 = scmp.lt.s32.totalorder %s256_s21, %s256_s21 }
  0x13   :  { %p263_p8 = por %p262_p7, %p261_p6 }
  0x15   :  { %p264_p9 = pnand %p263_p8, %p257_p5 }
  0x17   :  { %267 = shalt.err (!%p264_p9)
}
  0x18   :  { %s298_s22 = smov 256   ;;  %s299_s23 = smov 16  }
  0x19   :  { %34 = dma.hbm_to_vmem [thread:$0]  %s341_s1, 4096, %s29_s20, [#allocation6], %s298_s22, %s298_s22, %s299_s23  }
  0x1a   :  { %288 = dma.done.wait [#allocation3], 256  }
  0x1b   :  { %289 = vsyncadd [#allocation3], 4294967040 }
  0x1c   :  { %290 = dma.done.wait [#allocation6], 4096  }
  0x1d   :  { %291 = vsyncadd [#allocation6], 4294963200  ;;  %v300_v0 = vmov 0.0   ;;  %v76_v1 = vld [vmem:[#allocation5 + $0xf8] sm:$0xff]  ;;  %v75_v2 = vld [vmem:[#allocation5 + $0xf0] sm:$0xff]  ;;  %v79_v35 = vlaneseq  ;;  %s301_s26 = smov [#allocation7]  }
  0x1e   :  { %153 = vmatprep.mubr.f32.mxu0 %v300_v0  ;;  %159 = vmatprep.mubr.f32.mxu1 %v300_v0  ;;  %v74_v3 = vld [vmem:[#allocation5 + $0xe8] sm:$0xff]  ;;  %v73_v4 = vld [vmem:[#allocation5 + $0xe0] sm:$0xff]  ;;  %v72_v5 = vld [vmem:[#allocation5 + $0xd8] sm:$0xff]  ;;  %s175_s27 = sshll.u32 %s301_s26, 4  ;;  %s176_s27 = int_to_ptr.vmem [resolvable:$true] %s175_s27 }
  0x1f   :  { %89 = vmatprep.subr.mxu0 %v76_v1  ;;  %188 = vmatprep.subr.mxu1 %v76_v1  ;;  %v71_v6 = vld [vmem:[#allocation5 + $0xd0] sm:$0xff]  ;;  %v70_v7 = vld [vmem:[#allocation5 + $0xc8] sm:$0xff]  ;;  %v69_v8 = vld [vmem:[#allocation5 + $0xc0] sm:$0xff]  ;;  %v80_v36 = vshrl.u32 %v79_v35, 7  ;;  %s268_s28 = scalar_lea.vmem %s176_s27, 512  ;;  %p273_p11 = scmp.lt.s32.totalorder %s176_s27, %s176_s27 }
  0x20   :  { %90 = vmatpush1.msra.mxu0 %v75_v2  ;;  %204 = vmatpush1.msra.mxu1 %v75_v2  ;;  %v68_v9 = vld [vmem:[#allocation5 + $0xb8] sm:$0xff]  ;;  %v67_v10 = vld [vmem:[#allocation5 + $0xb0] sm:$0xff]  ;;  %v66_v11 = vld [vmem:[#allocation5 + $0xa8] sm:$0xff]  ;;  %p269_p10 = scmp.ne.s32.totalorder %s176_s27, %s268_s28  ;;  %p274_p12 = scmp.lt.s32.totalorder %s268_s28, %s268_s28 }
  0x21   :  { %91 = vmatprep.subr.mxu0 %v74_v3  ;;  %189 = vmatprep.subr.mxu1 %v74_v3  ;;  %v65_v12 = vld [vmem:[#allocation5 + $0xa0] sm:$0xff]  ;;  %v64_v13 = vld [vmem:[#allocation5 + $0x98] sm:$0xff]  ;;  %v63_v14 = vld [vmem:[#allocation5 + $0x90] sm:$0xff]  ;;  %v81_v37 = vsub.s32 0, %v80_v36  ;;  %v85_v39 = vsub.s32 1, %v80_v36 }
  0x22   :  { %92 = vmatpush1.msra.mxu0 %v73_v4  ;;  %205 = vmatpush1.msra.mxu1 %v73_v4  ;;  %v62_v15 = vld [vmem:[#allocation5 + $0x88] sm:$0xff]  ;;  %v61_v16 = vld [vmem:[#allocation5 + $0x80] sm:$0xff]  ;;  %v60_v17 = vld [vmem:[#allocation5 + $0x78] sm:$0xff]  ;;  %p275_p13 = por %p274_p12, %p273_p11 }
  0x23   :  { %93 = vmatprep.subr.mxu0 %v72_v5  ;;  %190 = vmatprep.subr.mxu1 %v72_v5  ;;  %v59_v18 = vld [vmem:[#allocation5 + $0x70] sm:$0xff]  ;;  %v58_v19 = vld [vmem:[#allocation5 + $0x68] sm:$0xff]  ;;  %v57_v20 = vld [vmem:[#allocation5 + $0x60] sm:$0xff] }
  0x24   :  { %94 = vmatpush1.msra.mxu0 %v71_v6  ;;  %206 = vmatpush1.msra.mxu1 %v71_v6  ;;  %v56_v21 = vld [vmem:[#allocation5 + $0x58] sm:$0xff]  ;;  %v55_v22 = vld [vmem:[#allocation5 + $0x50] sm:$0xff]  ;;  %v54_v23 = vld [vmem:[#allocation5 + $0x48] sm:$0xff]  ;;  %p276_p0 = pnand %p275_p13, %p269_p10 }
  0x25   :  { %95 = vmatprep.subr.mxu0 %v70_v7  ;;  %191 = vmatprep.subr.mxu1 %v70_v7  ;;  %v53_v24 = vld [vmem:[#allocation5 + $0x40] sm:$0xff]  ;;  %v52_v25 = vld [vmem:[#allocation5 + $0x38] sm:$0xff]  ;;  %v51_v26 = vld [vmem:[#allocation5 + $0x30] sm:$0xff] }
  0x26   :  { %96 = vmatpush1.msra.mxu0 %v69_v8  ;;  %207 = vmatpush1.msra.mxu1 %v69_v8  ;;  %v50_v27 = vld [vmem:[#allocation5 + $0x28] sm:$0xff]  ;;  %v49_v28 = vld [vmem:[#allocation5 + $0x20] sm:$0xff]  ;;  %v48_v29 = vld [vmem:[#allocation5 + $0x18] sm:$0xff] }
  0x27   :  { %97 = vmatprep.subr.mxu0 %v68_v9  ;;  %192 = vmatprep.subr.mxu1 %v68_v9  ;;  %v47_v30 = vld [vmem:[#allocation5 + $0x10] sm:$0xff]  ;;  %v46_v31 = vld [vmem:[#allocation5 + $0x8] sm:$0xff]  ;;  %v45_v32 = vld [vmem:[#allocation5] sm:$0xff] }
  0x28   :  { %98 = vmatpush1.msra.mxu0 %v67_v10  ;;  %208 = vmatpush1.msra.mxu1 %v67_v10  ;;  %v43_v33 = vld [vmem:[#allocation2] sm:$0xff]  ;;  %v44_v34 = vld [vmem:[#allocation2 + $0x8] sm:$0xff] }
  0x29   :  { %99 = vmatprep.subr.mxu0 %v66_v11  ;;  %193 = vmatprep.subr.mxu1 %v66_v11  ;;  %v77_v38 = vld [vmem:[%s342_s2] sm:$0x3] }
  0x2a   :  { %100 = vmatpush1.msra.mxu0 %v65_v12  ;;  %209 = vmatpush1.msra.mxu1 %v65_v12  ;;  %v82_v40 = vrot.slane %v77_v38, %v81_v37  ;;  %v86_v41 = vrot.slane %v77_v38, %v85_v39 }
  0x2b   :  { %101 = vmatprep.subr.mxu0 %v64_v13  ;;  %194 = vmatprep.subr.mxu1 %v64_v13 }
  0x2c   :  { %102 = vmatpush1.msra.mxu0 %v63_v14  ;;  %210 = vmatpush1.msra.mxu1 %v63_v14 }
  0x2d   :  { %103 = vmatprep.subr.mxu0 %v62_v15  ;;  %195 = vmatprep.subr.mxu1 %v62_v15 }
  0x2e   :  { %104 = vmatpush1.msra.mxu0 %v61_v16  ;;  %211 = vmatpush1.msra.mxu1 %v61_v16 }
  0x2f   :  { %105 = vmatprep.subr.mxu0 %v60_v17  ;;  %196 = vmatprep.subr.mxu1 %v60_v17 }
  0x30   :  { %106 = vmatpush1.msra.mxu0 %v59_v18  ;;  %212 = vmatpush1.msra.mxu1 %v59_v18 }
  0x31   :  { %107 = vmatprep.subr.mxu0 %v58_v19  ;;  %197 = vmatprep.subr.mxu1 %v58_v19 }
  0x32   :  { %108 = vmatpush1.msra.mxu0 %v57_v20  ;;  %213 = vmatpush1.msra.mxu1 %v57_v20 }
  0x33   :  { %109 = vmatprep.subr.mxu0 %v56_v21  ;;  %198 = vmatprep.subr.mxu1 %v56_v21 }
  0x34   :  { %110 = vmatpush1.msra.mxu0 %v55_v22  ;;  %214 = vmatpush1.msra.mxu1 %v55_v22 }
  0x35   :  { %111 = vmatprep.subr.mxu0 %v54_v23  ;;  %199 = vmatprep.subr.mxu1 %v54_v23 }
  0x36   :  { %112 = vmatpush1.msra.mxu0 %v53_v24  ;;  %215 = vmatpush1.msra.mxu1 %v53_v24 }
  0x37   :  { %113 = vmatprep.subr.mxu0 %v52_v25  ;;  %200 = vmatprep.subr.mxu1 %v52_v25 }
  0x38   :  { %114 = vmatpush1.msra.mxu0 %v51_v26  ;;  %216 = vmatpush1.msra.mxu1 %v51_v26 }
  0x39   :  { %115 = vmatprep.subr.mxu0 %v50_v27  ;;  %201 = vmatprep.subr.mxu1 %v50_v27 }
  0x3a   :  { %116 = vmatpush1.msra.mxu0 %v49_v28  ;;  %217 = vmatpush1.msra.mxu1 %v49_v28 }
  0x3b   :  { %117 = vmatprep.subr.mxu0 %v48_v29  ;;  %202 = vmatprep.subr.mxu1 %v48_v29 }
  0x3c   :  { %118 = vmatpush1.msra.mxu0 %v47_v30  ;;  %218 = vmatpush1.msra.mxu1 %v47_v30 }
  0x3d   :  { %119 = vmatprep.subr.mxu0 %v46_v31  ;;  %203 = vmatprep.subr.mxu1 %v46_v31 }
  0x3e   :  { %120 = vmatpush1.msra.mxu0 %v45_v32  ;;  %219 = vmatpush1.msra.mxu1 %v45_v32 }
  0x3f   :  { %154 = vmatmul.mubr.f32.vlgmr.msra.gmra.mxu0 %v43_v33  ;;  %160 = vmatmul.mubr.f32.vlgmr.msra.gmra.mxu1 %v44_v34 }
  0xff   :  { %v155_v42 = vpop.f32.mrf.mxu0  ;;  %v161_v43 = vpop.f32.mrf.mxu1 }
 0x100   :  { %v156_v44 = vadd.f32 %v155_v42, %v82_v40  ;;  %v162_v45 = vadd.f32 %v161_v43, %v82_v40 }
 0x101   :  { %v157_v46 = vpop.f32.mrf.mxu0  ;;  %v163_v47 = vpop.f32.mrf.mxu1 }
 0x102   :  { %166 = vst [vmem:[#allocation7] sm:$0xff] %v156_v44  ;;  %168 = vst [vmem:[#allocation7 + $0x10] sm:$0xff] %v162_v45  ;;  %v158_v48 = vadd.f32 %v157_v46, %v86_v41  ;;  %v164_v49 = vadd.f32 %v163_v47, %v86_v41 }
 0x104   :  { %167 = vst [vmem:[#allocation7 + $0x8] sm:$0xff] %v158_v48  ;;  %169 = vst [vmem:[#allocation7 + $0x18] sm:$0xff] %v164_v49 }
 0x105   :  { %279 = shalt.err (!%p276_p0)
}
 0x106   :  { %181 = dma.vmem_to_hbm [thread:$0]  %s176_s27, 512, %s343_s3, [#allocation4], %s298_s22, %s298_s22, %s299_s23  }
 0x107   :  { %292 = dma.done.wait [#allocation4], 512  }
 0x108   :  { %293 = vsyncadd [#allocation4], 4294966784 }
 0x109   :  { %185 = vsyncpa [#allocation3], 1 }
 0x10a   :  { %186 = vsyncpa [#allocation6], 1 }
 0x10b   :  { %187 = vsyncpa [#allocation4], 1 }

</bundles_post_ra>
